<compile_context>
chip_gen: v7x
topology: tpu7x:2x2x1
jax: 0.10.0
libtpu: 0.0.40
codegen_flags: <defaults>
</compile_context>

<pallas_src>
import math
import functools

import jax
import jax.numpy as jnp
from jax import lax
from jax.experimental import pallas as pl
from jax.experimental.pallas import tpu as pltpu


def _self_attention_kernel(x_ref, wqkv_ref, bqkv_ref, ctx_ref, probs_ref,
                           *, num_heads, head_size):
    """Fused self-attention for a single batch element.

    x_ref    : [1, S, H]     bf16  (H = num_heads * head_size)
    wqkv_ref : [H, 3H]       bf16  pre-transposed [in, out]; q-part pre-scaled
    bqkv_ref : [1, 3H]       f32   q-part pre-scaled
    ctx_ref  : [1, S, H]     f32
    probs_ref: [1, nh, S, S] f32
    """
    H = num_heads * head_size
    x = x_ref[0]                                         # [S, H] bf16

    # Fused QKV projection: one bf16 MXU matmul, f32 accumulation, f32 bias.
    qkv = jnp.dot(x, wqkv_ref[...],
                  preferred_element_type=jnp.float32) + bqkv_ref[0]   # [S, 3H] f32

    ctx_tiles = []
    for h in range(num_heads):                           # static unroll over heads
        lo, hi = h * head_size, (h + 1) * head_size
        q = qkv[:, lo:hi]                                # [S, hd] (scale pre-folded)
        k = qkv[:, H + lo:H + hi]                        # [S, hd]
        v = qkv[:, 2 * H + lo:2 * H + hi]                # [S, hd]

        # scores = q @ k.T : contract the head dim directly (no explicit transpose)
        scores = lax.dot_general(
            q.astype(jnp.bfloat16), k.astype(jnp.bfloat16),
            dimension_numbers=(((1,), (1,)), ((), ())),
            preferred_element_type=jnp.float32)          # [S, S] f32

        # Softmax over keys, all in f32.
        m = jnp.max(scores, axis=-1, keepdims=True)
        e = jnp.exp(scores - m)
        denom = jnp.sum(e, axis=-1, keepdims=True)
        probs = e * pl.reciprocal(denom, approx=True)    # divide -> EUP + VPU mul

        # (dropout is identity in eval mode)

        ctx = jnp.dot(probs.astype(jnp.bfloat16), v.astype(jnp.bfloat16),
                      preferred_element_type=jnp.float32)    # [S, hd] f32

        probs_ref[0, h] = probs.astype(probs_ref.dtype)
        ctx_tiles.append(ctx)

    # Single wide [S, H] store instead of nh narrow column stores.
    ctx_ref[0] = jnp.concatenate(ctx_tiles, axis=-1).astype(ctx_ref.dtype)


def self_attention(hidden_states, wq, bq, wk, bk, wv, bv, *, num_heads):
    """Runs the fused Pallas self-attention.

    hidden_states: [B, S, H] float32
    wq/wk/wv     : [H, H] (PyTorch [out, in]), bq/bk/bv: [H]
    Returns (context [B, S, H], attention_probs [B, nh, S, S]), both f32.
    """
    B, S, H = hidden_states.shape
    assert H % num_heads == 0
    head_size = H // num_heads
    inv_sqrt_hd = 1.0 / math.sqrt(head_size)

    # Fuse + pre-transpose the QKV weights to [in, out] = [H, 3H], folding the
    # 1/sqrt(hd) scale into the query weight/bias. Cast weights & activations
    # to bf16 for the MXU; keep biases (added post-accumulation) in f32.
    wqkv = jnp.concatenate(
        [wq.T * inv_sqrt_hd, wk.T, wv.T], axis=1).astype(jnp.bfloat16)   # [H, 3H]
    bqkv = jnp.concatenate(
        [bq * inv_sqrt_hd, bk, bv]).reshape(1, 3 * H).astype(jnp.float32)
    x_bf16 = hidden_states.astype(jnp.bfloat16)

    kernel = functools.partial(_self_attention_kernel,
                               num_heads=num_heads, head_size=head_size)

    ctx, probs = pl.pallas_call(
        kernel,
        out_shape=(
            jax.ShapeDtypeStruct((B, S, H), jnp.float32),
            jax.ShapeDtypeStruct((B, num_heads, S, S), jnp.float32),
        ),
        grid_spec=pltpu.PrefetchScalarGridSpec(
            num_scalar_prefetch=0,
            grid=(B,),
            in_specs=[
                pl.BlockSpec((1, S, H), lambda b: (b, 0, 0)),     # x (bf16)
                pl.BlockSpec((H, 3 * H), lambda b: (0, 0)),       # fused W (bf16)
                pl.BlockSpec((1, 3 * H), lambda b: (0, 0)),       # fused bias (f32)
            ],
            out_specs=[
                pl.BlockSpec((1, S, H), lambda b: (b, 0, 0)),
                pl.BlockSpec((1, num_heads, S, S), lambda b: (b, 0, 0, 0)),
            ],
        ),
        compiler_params=pltpu.CompilerParams(
            dimension_semantics=("parallel",),
            vmem_limit_bytes=64 * 1024 * 1024),
    )(x_bf16, wqkv, bqkv)
    return ctx, probs


def _reference(hidden_states, wq, bq, wk, bk, wv, bv, *, num_heads):
    """Pure-JAX f32 reference mirroring the PyTorch forward."""
    B, S, H = hidden_states.shape
    hd = H // num_heads

    def split(x):  # [B,S,H] -> [B,nh,S,hd]
        return x.reshape(B, S, num_heads, hd).transpose(0, 2, 1, 3)

    q = split(hidden_states @ wq.T + bq)
    k = split(hidden_states @ wk.T + bk)
    v = split(hidden_states @ wv.T + bv)
    scores = jnp.einsum('bhqd,bhkd->bhqk', q, k) / math.sqrt(hd)
    probs = jax.nn.softmax(scores, axis=-1)
    ctx = jnp.einsum('bhqk,bhkd->bhqd', probs, v)
    ctx = ctx.transpose(0, 2, 1, 3).reshape(B, S, H)
    return ctx, probs


if __name__ == "__main__":
    # config: hidden_size=32, num_attention_heads=4, seq=8, batch=2
    B, S, H, NH = 2, 8, 32, 4

    key = jax.random.PRNGKey(0)
    kx, kq, kk, kv, kbq, kbk, kbv = jax.random.split(key, 7)

    x = jax.random.normal(kx, (B, S, H), dtype=jnp.float32)

    scale = 1.0 / math.sqrt(H)
    wq = jax.random.uniform(kq, (H, H), jnp.float32, -scale, scale)
    wk = jax.random.uniform(kk, (H, H), jnp.float32, -scale, scale)
    wv = jax.random.uniform(kv, (H, H), jnp.float32, -scale, scale)
    bq = jax.random.uniform(kbq, (H,), jnp.float32, -scale, scale)
    bk = jax.random.uniform(kbk, (H,), jnp.float32, -scale, scale)
    bv = jax.random.uniform(kbv, (H,), jnp.float32, -scale, scale)

    ctx, probs = self_attention(x, wq, bq, wk, bk, wv, bv, num_heads=NH)
    jax.block_until_ready((ctx, probs))

    ctx_ref, probs_ref = _reference(x, wq, bq, wk, bk, wv, bv, num_heads=NH)

    # Tolerances account for bf16 matmul operands (f32 accumulation) and the
    # approximate EUP reciprocal, compared against a pure-f32 reference.
    assert jnp.allclose(probs, probs_ref, atol=2e-2, rtol=2e-2), \
        float(jnp.max(jnp.abs(probs - probs_ref)))
    assert jnp.allclose(ctx, ctx_ref, atol=5e-2, rtol=5e-2), \
        float(jnp.max(jnp.abs(ctx - ctx_ref)))

    print("KERNEL_OK")
</pallas_src>

<mosaic_0001>
module attributes {stable_mosaic.version = 11 : i64} {
  func.func @_self_attention_kernel(%arg0: i32, %arg1: memref<1x8x32xbf16, #tpu.memory_space<vmem>>, %arg2: memref<32x96xbf16, #tpu.memory_space<vmem>>, %arg3: memref<1x96xf32, #tpu.memory_space<vmem>>, %arg4: memref<1x8x32xf32, #tpu.memory_space<vmem>>, %arg5: memref<1x4x8x8xf32, #tpu.memory_space<vmem>>) attributes {dimension_semantics = [#tpu.dimension_semantics<parallel>], iteration_bounds = array<i64: 2>, scalar_prefetch = 0 : i64, scratch_operands = 0 : i64, tpu.core_type = #tpu.core_type<tc>, window_params = [{transform_indices = @transform_0, window_bounds = array<i64: 1, 8, 32>}, {pipeline_mode = #tpu.pipeline_mode<synchronous>, transform_indices = @transform_1, window_bounds = array<i64: 32, 96>}, {pipeline_mode = #tpu.pipeline_mode<synchronous>, transform_indices = @transform_2, window_bounds = array<i64: 1, 96>}, {transform_indices = @transform_3, window_bounds = array<i64: 1, 8, 32>}, {transform_indices = @transform_4, window_bounds = array<i64: 1, 4, 8, 8>}]} {
    %c0 = arith.constant 0 : index
    %c0_0 = arith.constant 0 : index
    %c0_1 = arith.constant 0 : index
    %0 = vector.load %arg1[%c0, %c0_0, %c0_1] : memref<1x8x32xbf16, #tpu.memory_space<vmem>>, vector<1x8x32xbf16>
    %1 = vector.shape_cast %0 : vector<1x8x32xbf16> to vector<8x32xbf16>
    %c0_2 = arith.constant 0 : index
    %c0_3 = arith.constant 0 : index
    %2 = vector.load %arg2[%c0_2, %c0_3] : memref<32x96xbf16, #tpu.memory_space<vmem>>, vector<32x96xbf16>
    %cst = arith.constant dense<0.000000e+00> : vector<8x96xf32>
    %3 = tpu.matmul %1, %2, %cst {dimension_numbers = #tpu.dot_dimension_numbers<[1], [0], [0], [1], [0, 0, 1, 1], [], []>} : vector<8x32xbf16>, vector<32x96xbf16>, vector<8x96xf32> -> vector<8x96xf32>
    %c0_4 = arith.constant 0 : index
    %c0_5 = arith.constant 0 : index
    %4 = vector.load %arg3[%c0_4, %c0_5] : memref<1x96xf32, #tpu.memory_space<vmem>>, vector<1x96xf32>
    %5 = vector.shape_cast %4 : vector<1x96xf32> to vector<96xf32>
    %6 = vector.shape_cast %5 : vector<96xf32> to vector<1x96xf32>
    %7 = vector.broadcast %6 : vector<1x96xf32> to vector<8x96xf32>
    %8 = arith.addf %3, %7 : vector<8x96xf32>
    %9 = vector.extract_strided_slice %8 {offsets = [0, 0], sizes = [8, 8], strides = [1, 1]} : vector<8x96xf32> to vector<8x8xf32>
    %10 = vector.extract_strided_slice %8 {offsets = [0, 32], sizes = [8, 8], strides = [1, 1]} : vector<8x96xf32> to vector<8x8xf32>
    %11 = vector.extract_strided_slice %8 {offsets = [0, 64], sizes = [8, 8], strides = [1, 1]} : vector<8x96xf32> to vector<8x8xf32>
    %12 = arith.truncf %9 : vector<8x8xf32> to vector<8x8xbf16>
    %13 = arith.truncf %10 : vector<8x8xf32> to vector<8x8xbf16>
    %cst_6 = arith.constant dense<0.000000e+00> : vector<8x8xf32>
    %14 = tpu.matmul %12, %13, %cst_6 {dimension_numbers = #tpu.dot_dimension_numbers<[1], [1], [0], [0], [0, 0, 1, 0], [], []>} : vector<8x8xbf16>, vector<8x8xbf16>, vector<8x8xf32> -> vector<8x8xf32>
    %cst_7 = arith.constant dense<0xFF800000> : vector<8xf32>
    %15 = vector.multi_reduction <maximumf>, %14, %cst_7 [1] : vector<8x8xf32> to vector<8xf32>
    %16 = vector.shape_cast %15 : vector<8xf32> to vector<8x1xf32>
    %17 = vector.broadcast %16 : vector<8x1xf32> to vector<8x8xf32>
    %18 = arith.subf %14, %17 : vector<8x8xf32>
    %19 = math.exp %18 : vector<8x8xf32>
    %cst_8 = arith.constant dense<0.000000e+00> : vector<8xf32>
    %20 = vector.multi_reduction <add>, %19, %cst_8 [1] : vector<8x8xf32> to vector<8xf32>
    %21 = vector.shape_cast %20 : vector<8xf32> to vector<8x1xf32>
    %22 = tpu.reciprocal %21 {approx = true} : vector<8x1xf32> -> vector<8x1xf32>
    %23 = vector.broadcast %22 : vector<8x1xf32> to vector<8x8xf32>
    %24 = arith.mulf %19, %23 : vector<8x8xf32>
    %25 = arith.truncf %24 : vector<8x8xf32> to vector<8x8xbf16>
    %26 = arith.truncf %11 : vector<8x8xf32> to vector<8x8xbf16>
    %cst_9 = arith.constant dense<0.000000e+00> : vector<8x8xf32>
    %27 = tpu.matmul %25, %26, %cst_9 {dimension_numbers = #tpu.dot_dimension_numbers<[1], [0], [0], [1], [0, 0, 1, 1], [], []>} : vector<8x8xbf16>, vector<8x8xbf16>, vector<8x8xf32> -> vector<8x8xf32>
    %c0_10 = arith.constant 0 : index
    %c0_11 = arith.constant 0 : index
    %c0_12 = arith.constant 0 : index
    %c0_13 = arith.constant 0 : index
    %28 = vector.load %arg5[%c0_10, %c0_11, %c0_12, %c0_13] : memref<1x4x8x8xf32, #tpu.memory_space<vmem>>, vector<1x1x8x8xf32>
    %29 = vector.shape_cast %28 : vector<1x1x8x8xf32> to vector<8x8xf32>
    %30 = vector.shape_cast %24 : vector<8x8xf32> to vector<1x1x8x8xf32>
    tpu.vector_store %arg5[%c0_10, %c0_11, %c0_12, %c0_13], %30 {strides = array<i32>} : memref<1x4x8x8xf32, #tpu.memory_space<vmem>>, vector<1x1x8x8xf32>,
    %31 = vector.extract_strided_slice %8 {offsets = [0, 8], sizes = [8, 8], strides = [1, 1]} : vector<8x96xf32> to vector<8x8xf32>
    %32 = vector.extract_strided_slice %8 {offsets = [0, 40], sizes = [8, 8], strides = [1, 1]} : vector<8x96xf32> to vector<8x8xf32>
    %33 = vector.extract_strided_slice %8 {offsets = [0, 72], sizes = [8, 8], strides = [1, 1]} : vector<8x96xf32> to vector<8x8xf32>
    %34 = arith.truncf %31 : vector<8x8xf32> to vector<8x8xbf16>
    %35 = arith.truncf %32 : vector<8x8xf32> to vector<8x8xbf16>
    %cst_14 = arith.constant dense<0.000000e+00> : vector<8x8xf32>
    %36 = tpu.matmul %34, %35, %cst_14 {dimension_numbers = #tpu.dot_dimension_numbers<[1], [1], [0], [0], [0, 0, 1, 0], [], []>} : vector<8x8xbf16>, vector<8x8xbf16>, vector<8x8xf32> -> vector<8x8xf32>
    %cst_15 = arith.constant dense<0xFF800000> : vector<8xf32>
    %37 = vector.multi_reduction <maximumf>, %36, %cst_15 [1] : vector<8x8xf32> to vector<8xf32>
    %38 = vector.shape_cast %37 : vector<8xf32> to vector<8x1xf32>
    %39 = vector.broadcast %38 : vector<8x1xf32> to vector<8x8xf32>
    %40 = arith.subf %36, %39 : vector<8x8xf32>
    %41 = math.exp %40 : vector<8x8xf32>
    %cst_16 = arith.constant dense<0.000000e+00> : vector<8xf32>
    %42 = vector.multi_reduction <add>, %41, %cst_16 [1] : vector<8x8xf32> to vector<8xf32>
    %43 = vector.shape_cast %42 : vector<8xf32> to vector<8x1xf32>
    %44 = tpu.reciprocal %43 {approx = true} : vector<8x1xf32> -> vector<8x1xf32>
    %45 = vector.broadcast %44 : vector<8x1xf32> to vector<8x8xf32>
    %46 = arith.mulf %41, %45 : vector<8x8xf32>
    %47 = arith.truncf %46 : vector<8x8xf32> to vector<8x8xbf16>
    %48 = arith.truncf %33 : vector<8x8xf32> to vector<8x8xbf16>
    %cst_17 = arith.constant dense<0.000000e+00> : vector<8x8xf32>
    %49 = tpu.matmul %47, %48, %cst_17 {dimension_numbers = #tpu.dot_dimension_numbers<[1], [0], [0], [1], [0, 0, 1, 1], [], []>} : vector<8x8xbf16>, vector<8x8xbf16>, vector<8x8xf32> -> vector<8x8xf32>
    %c0_18 = arith.constant 0 : index
    %c1 = arith.constant 1 : index
    %c0_19 = arith.constant 0 : index
    %c0_20 = arith.constant 0 : index
    %50 = vector.load %arg5[%c0_18, %c1, %c0_19, %c0_20] : memref<1x4x8x8xf32, #tpu.memory_space<vmem>>, vector<1x1x8x8xf32>
    %51 = vector.shape_cast %50 : vector<1x1x8x8xf32> to vector<8x8xf32>
    %52 = vector.shape_cast %46 : vector<8x8xf32> to vector<1x1x8x8xf32>
    tpu.vector_store %arg5[%c0_18, %c1, %c0_19, %c0_20], %52 {strides = array<i32>} : memref<1x4x8x8xf32, #tpu.memory_space<vmem>>, vector<1x1x8x8xf32>,
    %53 = vector.extract_strided_slice %8 {offsets = [0, 16], sizes = [8, 8], strides = [1, 1]} : vector<8x96xf32> to vector<8x8xf32>
    %54 = vector.extract_strided_slice %8 {offsets = [0, 48], sizes = [8, 8], strides = [1, 1]} : vector<8x96xf32> to vector<8x8xf32>
    %55 = vector.extract_strided_slice %8 {offsets = [0, 80], sizes = [8, 8], strides = [1, 1]} : vector<8x96xf32> to vector<8x8xf32>
    %56 = arith.truncf %53 : vector<8x8xf32> to vector<8x8xbf16>
    %57 = arith.truncf %54 : vector<8x8xf32> to vector<8x8xbf16>
    %cst_21 = arith.constant dense<0.000000e+00> : vector<8x8xf32>
    %58 = tpu.matmul %56, %57, %cst_21 {dimension_numbers = #tpu.dot_dimension_numbers<[1], [1], [0], [0], [0, 0, 1, 0], [], []>} : vector<8x8xbf16>, vector<8x8xbf16>, vector<8x8xf32> -> vector<8x8xf32>
    %cst_22 = arith.constant dense<0xFF800000> : vector<8xf32>
    %59 = vector.multi_reduction <maximumf>, %58, %cst_22 [1] : vector<8x8xf32> to vector<8xf32>
    %60 = vector.shape_cast %59 : vector<8xf32> to vector<8x1xf32>
    %61 = vector.broadcast %60 : vector<8x1xf32> to vector<8x8xf32>
    %62 = arith.subf %58, %61 : vector<8x8xf32>
    %63 = math.exp %62 : vector<8x8xf32>
    %cst_23 = arith.constant dense<0.000000e+00> : vector<8xf32>
    %64 = vector.multi_reduction <add>, %63, %cst_23 [1] : vector<8x8xf32> to vector<8xf32>
    %65 = vector.shape_cast %64 : vector<8xf32> to vector<8x1xf32>
    %66 = tpu.reciprocal %65 {approx = true} : vector<8x1xf32> -> vector<8x1xf32>
    %67 = vector.broadcast %66 : vector<8x1xf32> to vector<8x8xf32>
    %68 = arith.mulf %63, %67 : vector<8x8xf32>
    %69 = arith.truncf %68 : vector<8x8xf32> to vector<8x8xbf16>
    %70 = arith.truncf %55 : vector<8x8xf32> to vector<8x8xbf16>
    %cst_24 = arith.constant dense<0.000000e+00> : vector<8x8xf32>
    %71 = tpu.matmul %69, %70, %cst_24 {dimension_numbers = #tpu.dot_dimension_numbers<[1], [0], [0], [1], [0, 0, 1, 1], [], []>} : vector<8x8xbf16>, vector<8x8xbf16>, vector<8x8xf32> -> vector<8x8xf32>
    %c0_25 = arith.constant 0 : index
    %c2 = arith.constant 2 : index
    %c0_26 = arith.constant 0 : index
    %c0_27 = arith.constant 0 : index
    %72 = vector.load %arg5[%c0_25, %c2, %c0_26, %c0_27] : memref<1x4x8x8xf32, #tpu.memory_space<vmem>>, vector<1x1x8x8xf32>
    %73 = vector.shape_cast %72 : vector<1x1x8x8xf32> to vector<8x8xf32>
    %74 = vector.shape_cast %68 : vector<8x8xf32> to vector<1x1x8x8xf32>
    tpu.vector_store %arg5[%c0_25, %c2, %c0_26, %c0_27], %74 {strides = array<i32>} : memref<1x4x8x8xf32, #tpu.memory_space<vmem>>, vector<1x1x8x8xf32>,
    %75 = vector.extract_strided_slice %8 {offsets = [0, 24], sizes = [8, 8], strides = [1, 1]} : vector<8x96xf32> to vector<8x8xf32>
    %76 = vector.extract_strided_slice %8 {offsets = [0, 56], sizes = [8, 8], strides = [1, 1]} : vector<8x96xf32> to vector<8x8xf32>
    %77 = vector.extract_strided_slice %8 {offsets = [0, 88], sizes = [8, 8], strides = [1, 1]} : vector<8x96xf32> to vector<8x8xf32>
    %78 = arith.truncf %75 : vector<8x8xf32> to vector<8x8xbf16>
    %79 = arith.truncf %76 : vector<8x8xf32> to vector<8x8xbf16>
    %cst_28 = arith.constant dense<0.000000e+00> : vector<8x8xf32>
    %80 = tpu.matmul %78, %79, %cst_28 {dimension_numbers = #tpu.dot_dimension_numbers<[1], [1], [0], [0], [0, 0, 1, 0], [], []>} : vector<8x8xbf16>, vector<8x8xbf16>, vector<8x8xf32> -> vector<8x8xf32>
    %cst_29 = arith.constant dense<0xFF800000> : vector<8xf32>
    %81 = vector.multi_reduction <maximumf>, %80, %cst_29 [1] : vector<8x8xf32> to vector<8xf32>
    %82 = vector.shape_cast %81 : vector<8xf32> to vector<8x1xf32>
    %83 = vector.broadcast %82 : vector<8x1xf32> to vector<8x8xf32>
    %84 = arith.subf %80, %83 : vector<8x8xf32>
    %85 = math.exp %84 : vector<8x8xf32>
    %cst_30 = arith.constant dense<0.000000e+00> : vector<8xf32>
    %86 = vector.multi_reduction <add>, %85, %cst_30 [1] : vector<8x8xf32> to vector<8xf32>
    %87 = vector.shape_cast %86 : vector<8xf32> to vector<8x1xf32>
    %88 = tpu.reciprocal %87 {approx = true} : vector<8x1xf32> -> vector<8x1xf32>
    %89 = vector.broadcast %88 : vector<8x1xf32> to vector<8x8xf32>
    %90 = arith.mulf %85, %89 : vector<8x8xf32>
    %91 = arith.truncf %90 : vector<8x8xf32> to vector<8x8xbf16>
    %92 = arith.truncf %77 : vector<8x8xf32> to vector<8x8xbf16>
    %cst_31 = arith.constant dense<0.000000e+00> : vector<8x8xf32>
    %93 = tpu.matmul %91, %92, %cst_31 {dimension_numbers = #tpu.dot_dimension_numbers<[1], [0], [0], [1], [0, 0, 1, 1], [], []>} : vector<8x8xbf16>, vector<8x8xbf16>, vector<8x8xf32> -> vector<8x8xf32>
    %c0_32 = arith.constant 0 : index
    %c3 = arith.constant 3 : index
    %c0_33 = arith.constant 0 : index
    %c0_34 = arith.constant 0 : index
    %94 = vector.load %arg5[%c0_32, %c3, %c0_33, %c0_34] : memref<1x4x8x8xf32, #tpu.memory_space<vmem>>, vector<1x1x8x8xf32>
    %95 = vector.shape_cast %94 : vector<1x1x8x8xf32> to vector<8x8xf32>
    %96 = vector.shape_cast %90 : vector<8x8xf32> to vector<1x1x8x8xf32>
    tpu.vector_store %arg5[%c0_32, %c3, %c0_33, %c0_34], %96 {strides = array<i32>} : memref<1x4x8x8xf32, #tpu.memory_space<vmem>>, vector<1x1x8x8xf32>,
    %97 = tpu.concatenate %27, %49, %71, %93 in 1 : vector<8x8xf32>, vector<8x8xf32>, vector<8x8xf32>, vector<8x8xf32> -> vector<8x32xf32>
    %c0_35 = arith.constant 0 : index
    %c0_36 = arith.constant 0 : index
    %c0_37 = arith.constant 0 : index
    %98 = vector.load %arg4[%c0_35, %c0_36, %c0_37] : memref<1x8x32xf32, #tpu.memory_space<vmem>>, vector<1x8x32xf32>
    %99 = vector.shape_cast %98 : vector<1x8x32xf32> to vector<8x32xf32>
    %100 = vector.shape_cast %97 : vector<8x32xf32> to vector<1x8x32xf32>
    tpu.vector_store %arg4[%c0_35, %c0_36, %c0_37], %100 {strides = array<i32>} : memref<1x8x32xf32, #tpu.memory_space<vmem>>, vector<1x8x32xf32>,
    return
  }
  func.func @transform_0(%arg0: i32) -> (i32, i32, i32) {
    %c0_i32 = arith.constant 0 : i32
    %c0_i32_0 = arith.constant 0 : i32
    %c0_i32_1 = arith.constant 0 : i32
    return %arg0, %c0_i32, %c0_i32_0 : i32, i32, i32
  }
  func.func @transform_1(%arg0: i32) -> (i32, i32) {
    %c0_i32 = arith.constant 0 : i32
    %c0_i32_0 = arith.constant 0 : i32
    %c0_i32_1 = arith.constant 0 : i32
    return %c0_i32, %c0_i32_0 : i32, i32
  }
  func.func @transform_2(%arg0: i32) -> (i32, i32) {
    %c0_i32 = arith.constant 0 : i32
    %c0_i32_0 = arith.constant 0 : i32
    %c0_i32_1 = arith.constant 0 : i32
    return %c0_i32, %c0_i32_0 : i32, i32
  }
  func.func @transform_3(%arg0: i32) -> (i32, i32, i32) {
    %c0_i32 = arith.constant 0 : i32
    %c0_i32_0 = arith.constant 0 : i32
    %c0_i32_1 = arith.constant 0 : i32
    return %arg0, %c0_i32, %c0_i32_0 : i32, i32, i32
  }
  func.func @transform_4(%arg0: i32) -> (i32, i32, i32, i32) {
    %c0_i32 = arith.constant 0 : i32
    %c0_i32_0 = arith.constant 0 : i32
    %c0_i32_1 = arith.constant 0 : i32
    %c0_i32_2 = arith.constant 0 : i32
    return %arg0, %c0_i32, %c0_i32_0, %c0_i32_1 : i32, i32, i32, i32
  }
}

</mosaic_0001>

<bundles_post_ra>
// kernel: tpu_custom_call.1
= control target key start
LH: loop header
LB: loop body
LE: loop exit
PB: predicated region body
PF: predicated region fallthrough
CT: control target
= control target key end

     0   :  { %10 = vsyncpa [#allocation3], 0  ;;  %s1751_s0 = inlined_call_operand.hbm [shape: bf16[2,8,32], index: 0, kind: input, shape index: {}]   ;;  %s1752_s1 = inlined_call_operand.hbm [shape: bf16[32,96], index: 1, kind: input, shape index: {}]   ;;  %s1753_s2 = inlined_call_operand.hbm [shape: f32[1,96], index: 2, kind: input, shape index: {}]   ;;  %s1754_s3 = inlined_call_operand.hbm [shape: f32[2,8,32], index: 3, kind: output, shape index: {0}]   ;;  %s1755_s4 = inlined_call_operand.hbm [shape: f32[2,4,8,8], index: 4, kind: output, shape index: {1}]  }
   0x1   :  { %12 = vsyncpa [#allocation3 + $0x1], 0 }
   0x2   :  { %13 = vsyncpa [#allocation6], 0 }
   0x3   :  { %14 = vsyncpa [#allocation4], 0 }
   0x4   :  { %16 = vsyncpa [#allocation4 + $0x1], 0 }
   0x5   :  { %17 = vsyncpa [#allocation10], 0 }
   0x6   :  { %19 = vsyncpa [#allocation10 + $0x1], 0  ;;  %s1402_s15 = smov 0   ;;  %s1404_s16 = smov 0  }
   0x7   :  { %s1406_s17 = smov 0   ;;  %s1408_s18 = smov 0  }
   0x8 LB: > { %s1423_s19 = sadd.s32 4294967295, %s1351_s18   ;;  %s943_s20 = sadd.s32 4294967294, %s1351_s18   ;;  %s1351_s18 = sphi %s1408_s18, %s1775_s18   ;;  %s1347_s17 = sphi %s1406_s17, %s1774_s17   ;;  %s1343_s16 = sphi %s1404_s16, %s1773_s16   ;;  %s1339_s15 = sphi %s1402_s15, %s1772_s15  }
   0x9   : > { %p45_p0 = scmp.ne.s32.totalorder %s1343_s16, %s1339_s15  ;;  %p1756_p1 = scmp.eq.s32.totalorder %s1423_s19, 0 }
   0xa   : > { %p117_p3 = scmp.eq.s32.totalorder %s943_s20, 1  ;;  %p944_p5 = scmp.ge.s32.totalorder %s1351_s18, 1 }
   0xb   : > { %p1432_p4 = por %p1756_p1, %p45_p0  ;;  %p150_p7 = scmp.lt.s32.totalorder %s1351_s18, 3 }
   0xc   : > { %p1437_p6 = por %p117_p3, %p45_p0  ;;  %s1353_s24 = smov [#allocation5]  }
   0xd   : > { %s1759_s21 = scalar_select %p1432_p4, 1, 0 }
   0xe   : > { %s1760_s22 = scalar_select %p1437_p6, 1, 0 }
   0xf   : > { %p1442_p8 = pnand %p944_p5, %p150_p7  ;;  %s162_s25 = sshll.u32 %s1353_s24, 4  ;;  %s1446_s25 = int_to_ptr.vmem [resolvable:$true] %s162_s25 }
  0x10   : > { %s1354_s27 = smov [#allocation7]   ;;  %s1163_s5 = scalar_lea.hbm %s1752_s1, 256 }
  0x11   : > { %p1068_p9 = pneg %p1442_p8  ;;  %s176_s28 = sshll.u32 %s1354_s27, 4  ;;  %s1457_s28 = int_to_ptr.vmem [resolvable:$true] %s176_s28 }
  0x12   : > { %p1164_p12 = scmp.ne.s32.totalorder %s1752_s1, %s1163_s5  ;;  %p1170_p5 = scmp.lt.u32.totalorder %s1163_s5, %s1752_s1 }
  0x13   : > { %p1453_p11 = pnand %p1068_p9, %p1756_p1 }
  0x15   : > { %p1165_p13 = pneg %p1453_p11 }
  0x17   : > { %p1166_p0 = pnand %p1165_p13, %p1164_p12 }
  0x19   : > { %p1167_p3 = pneg %p1166_p0 }
  0x1b   : > { %p1172_p7 = pnand %p1170_p5, %p1167_p3 }
  0x1d   : > { %1175 = shalt.err (!%p1172_p7)
}
  0x1e   : > { %s1176_s10 = scalar_lea.vmem %s1446_s25, 256  ;;  %p1184_p2 = scmp.lt.s32.totalorder %s1446_s25, %s1446_s25 }
  0x1f   : > { %p1177_p9 = scmp.ne.s32.totalorder %s1446_s25, %s1176_s10  ;;  %p1185_p12 = scmp.lt.s32.totalorder %s1176_s10, %s1176_s10 }
  0x21   : > { %p1179_p10 = pnand %p1177_p9, %p1165_p13  ;;  %p1186_p0 = por %p1185_p12, %p1184_p2 }
  0x23   : > { %p1180_p1 = pneg %p1179_p10 }
  0x25   : > { %p1187_p6 = pnand %p1186_p0, %p1180_p1 }
  0x27   : > { %1190 = shalt.err (!%p1187_p6)
}
  0x28   : > { %s1355_s11 = smov 64   ;;  %s1356_s12 = smov 4  }
  0x29   : > { %1071 = dma.hbm_to_vmem [thread:$0]  (!%p1453_p11), %s1752_s1, 256, %s1446_s25, [#allocation6], %s1355_s11, %s1355_s11, %s1356_s12  }
  0x2a   : > { %s1191_s27 = scalar_lea.hbm %s1753_s2, 16 }
  0x2b   : > { %p1192_p2 = scmp.ne.s32.totalorder %s1753_s2, %s1191_s27  ;;  %p1198_p10 = scmp.lt.u32.totalorder %s1191_s27, %s1753_s2 }
  0x2d   : > { %p1194_p1 = pnand %p1192_p2, %p1165_p13 }
  0x2f   : > { %p1195_p6 = pneg %p1194_p1 }
  0x31   : > { %p1200_p3 = pnand %p1198_p10, %p1195_p6 }
  0x33   : > { %1203 = shalt.err (!%p1200_p3)
}
  0x34   : > { %s1204_s25 = scalar_lea.vmem %s1457_s28, 16  ;;  %s1211_s7 = scalar_lea.vmem %s1457_s28, 32 }
  0x35   : > { %p1205_p5 = scmp.ne.s32.totalorder %s1457_s28, %s1204_s25  ;;  %p1212_p12 = scmp.lt.s32.totalorder %s1457_s28, %s1457_s28 }
  0x36   : > { %p1213_p0 = scmp.lt.s32.totalorder %s1211_s7, %s1204_s25 }
  0x37   : > { %p1207_p7 = pnand %p1205_p5, %p1165_p13 }
  0x38   : > { %p1214_p2 = por %p1213_p0, %p1212_p12 }
  0x39   : > { %p1208_p9 = pneg %p1207_p7 }
  0x3b   : > { %p1215_p1 = pnand %p1214_p2, %p1208_p9 }
  0x3d   : > { %1218 = shalt.err (!%p1215_p1)
}
  0x3e   : > { %1074 = dma.hbm_to_vmem [thread:$0]  (!%p1453_p11), %s1753_s2, 16, %s1457_s28, [#allocation6]  }
  0x3f   : > { %s1513_s10 = sadd.s32 1, %s1351_s18   ;;  %s32_s26 = sadd.s32 1, %s1347_s17 }
  0x40   : > { %s29_s11 = ssub.s32 %s1351_s18, %s1513_s10  ;;  %p39_p13 = scmp.ne.s32.totalorder %s1347_s17, %s1343_s16 }
  0x41   : > { %p30_p6 = scmp.eq.s32.totalorder %s29_s11, 0  ;;  %p40_p10 = scmp.eq.s32.totalorder %s1351_s18, 0 }
  0x42   : > { %p1763_p3 = scmp.eq.s32.totalorder %s1423_s19, 1  ;;  %p1088_p7 = scmp.lt.s32.totalorder %s1351_s18, 2 }
  0x43   : > { %s1529_s13 = scalar_select %p30_p6, %s1347_s17, %s32_s26  }
  0x44   : > { %p1523_p5 = por %p1763_p3, %p39_p13  ;;  %p41_p9 = por %p40_p10, %p39_p13 }
  0x45   : > { %s187_s14 = sand.u32 1, %s1347_s17   ;;  %s949_s28 = sshll.u32 %s1351_s18, 6 }
  0x46   : > { %s1764_s12 = scalar_select %p1523_p5, 1, 0 }
  0x47   : > { %s948_s20 = sshll.u32 %s187_s14, 2  ;;  %s1536_s29 = scalar_lea.hbm %s1751_s0, %s949_s28 }
  0x48   : > { %s191_s30 = scalar_lea.vmem [#allocation2], %s948_s20  ;;  %p1540_p11 = pnand %p1088_p7, %p41_p9 }
  0x49   : > { %s198_s5 = sshll.u32 %s191_s30, 4  ;;  %s188_s25 = scalar_lea.sflag [#allocation3], %s187_s14  ;;  %s1538_s5 = int_to_ptr.vmem [resolvable:$true] %s198_s5 }
  0x4a   : > { %s1219_s7 = scalar_lea.hbm %s1536_s29, 64  ;;  %p1221_p0 = pneg %p1540_p11 }
  0x4b   : > { %p1220_p12 = scmp.ne.s32.totalorder %s1536_s29, %s1219_s7  ;;  %s1224_s26 = scalar_lea.hbm %s1751_s0, 128 }
  0x4c   : > { %p1225_p13 = scmp.lt.u32.totalorder %s1536_s29, %s1751_s0  ;;  %p1226_p6 = scmp.lt.u32.totalorder %s1224_s26, %s1219_s7 }
  0x4d   : > { %p1222_p2 = pnand %p1221_p0, %p1220_p12  ;;  %p1228_p3 = scmp.lt.u32.totalorder %s1219_s7, %s1536_s29 }
  0x4e   : > { %p1227_p10 = por %p1226_p6, %p1225_p13 }
  0x4f   : > { %p1223_p1 = pneg %p1222_p2 }
  0x50   : > { %p1229_p7 = por %p1228_p3, %p1227_p10 }
  0x52   : > { %p1230_p9 = pnand %p1229_p7, %p1223_p1 }
  0x54   : > { %1233 = shalt.err (!%p1230_p9)
}
  0x55   : > { %s1234_s14 = scalar_lea.vmem %s1538_s5, 64  ;;  %s1357_s28 = smov [#allocation2]  }
  0x56   : > { %p1235_p12 = scmp.ne.s32.totalorder %s1538_s5, %s1234_s14  ;;  %s1239_s24 = sshll.u32 %s1357_s28, 4  ;;  %s1240_s24 = int_to_ptr.vmem [resolvable:$false] %s1239_s24 }
  0x57   : > { %s1241_s27 = scalar_lea.vmem %s1240_s24, 128  ;;  %p1242_p4 = scmp.lt.s32.totalorder %s1538_s5, %s1240_s24 }
  0x58   : > { %p1237_p2 = pnand %p1235_p12, %p1221_p0  ;;  %p1243_p13 = scmp.lt.s32.totalorder %s1241_s27, %s1234_s14 }
  0x5a   : > { %p1238_p5 = pneg %p1237_p2  ;;  %p1244_p6 = por %p1243_p13, %p1242_p4 }
  0x5c   : > { %p1245_p10 = pnand %p1244_p6, %p1238_p5 }
  0x5e   : > { %1248 = shalt.err (!%p1245_p10)
}
  0x5f   : > { %1078 = dma.hbm_to_vmem [thread:$0]  (!%p1540_p11), %s1536_s29, 64, %s1538_s5, %s188_s25  }
  0x60   : > { %207 = sbr.rel (%p1442_p8) target bundleno = 1396 (0x574), region = 32  ;;  %s1572_s30 = sand.u32 (!%p1442_p8), 1, %s1343_s16  }
  0x61   : > { %s951_s7 = sshll.u32 (!%p1442_p8), %s1572_s30, 2  ;;  %s210_s8 = scalar_lea.sflag (!%p1442_p8), [#allocation3], %s1572_s30 }
  0x62   : > { %s213_s9 = scalar_lea.vmem (!%p1442_p8), [#allocation2], %s951_s7  ;;  %p1766_p4 = scmp.ne.s32.totalorder (!%p1442_p8), %s1759_s21, 0 }
  0x67   : > { %1322 = dma.done.wait (%p1766_p4), %s210_s8, 64  }
  0x68   : > { %1324 = vsyncadd (%p1766_p4), %s210_s8, 4294967232  ;;  %p1767_p5 = scmp.eq.s32.totalorder %s1423_s19, 0 }
  0x6a   : > { %1326 = dma.done.wait (%p1767_p5), [#allocation6], 272   ;;  %p1768_p11 = pmov %p1767_p5 }
  0x6b   : > { %v1358_v0 = vmov 0.0   ;;  %vm1359_vm0 = vmmov 0   ;;  %v1145_v1 = vld [vmem:[#allocation5] sm:$0xff]   ;;  %v1146_v2 = vld [vmem:[#allocation5 + $0x8] sm:$0xff]   ;;  %v252_v3 = vld [vmem:[%s213_s9] sm:$0xf] }
  0x6c   : > { %1328 = vsyncadd (%p1768_p11), [#allocation6], 4294967024  ;;  %998 = vmatprep.subr.bf16.mxu0 %v1358_v0  ;;  %1002 = vmatprep.mubr.msk.bf16.mxu0 %vm1359_vm0, %v1358_v0  ;;  %vm276_vm1 = vcmask 261120   ;;  %v956_v4 = vld [vmem:[#allocation7] ss:$0 sm:$0xff]  ;;  %s1360_s21 = smov 120  }
  0x6d   : > { %1006 = vmatprep.subr.bf16.mxu1 %v1358_v0  ;;  %1008 = vmatprep.mubr.msk.bf16.mxu1 %vm1359_vm0, %v1358_v0  ;;  %s1361_s23 = smov 96   ;;  %s1362_s29 = smov 80   ;;  %vm324_vm2 = vcmask 64512   ;;  %vm388_vm3 = vcmask 1043456  }
  0x6e   : > { %999 = vmatpush3.bf16.msra.mxu0 %v1145_v1  ;;  %s1363_s5 = smov 88   ;;  %s1364_s6 = smov 72  }
  0x6f   : > { %1000 = vmatprep.subr.bf16.mxu0 %v1358_v0  ;;  %s1365_s25 = smov 112   ;;  %s1366_s26 = smov 104  }
  0x70   : > { %s1367_s11 = smov 56   ;;  %s1368_s20 = smov 64  }
  0x71   : > { %s1369_s14 = smov 40   ;;  %s1370_s28 = smov 48  }
  0x72   : > { %1001 = vmatpush3.bf16.msra.mxu0 %v1146_v2  ;;  %s955_s24 = sshll.u32 %s1572_s30, 5  ;;  %s1371_s7 = smov 8  }
  0x73   : > { %1012 = vmatprep.subr.bf16.mxu0 %v1358_v0  ;;  %s1635_s27 = scalar_lea.vmem [#allocation9], %s955_s24  ;;  %s978_s8 = sshll.u32 %s1423_s19, 9 }
  0x74   : > { %s819_s9 = sshll.u32 %s1635_s27, 4  ;;  %p1769_p0 = scmp.ne.s32.totalorder %s1764_s12, 0  ;;  %s1672_s9 = int_to_ptr.vmem [resolvable:$true] %s819_s9 }
  0x75   : > { %1003 = vmatmul.mubr.msk.bf16.vlgmr.msra.gmra.mrb[0].mxu0 %vm276_vm1, %v252_v3 }
  0x76   : > { %1014 = vmatprep.mubr.msk.bf16.mxu0 %vm1359_vm0, %v1358_v0 }
 0x148   : > { %v314_v5 = vpop.f32.mrb[0].mxu0 }
 0x149   : > { %v315_v6 = vadd.f32 %v956_v4, %v314_v5  ;;  %v1004_v7 = vpop.f32.mrb[1].mxu0 }
 0x14a   : > { %v317_v8 = vpop.f32.mrb[2].mxu0 }
 0x14b   : > { %v1595_v9 = vpack.c.bf16 %v315_v6, %v315_v6  ;;  %v1005_v10 = vpop.f32.mrb[3].mxu0 }
 0x14d   : > { %433 = vrot.lane.b32.xlu1 %v1595_v9, %s1360_s21  ;;  %322 = vrot.lane.b32.xlu0 %v1595_v9, %s1361_s23 }
 0x151   : > { %547 = vrot.lane.b32.xlu1 %v1595_v9, %s1362_s29  ;;  %435 = vrot.lane.b32.xlu0 %v1595_v9, %s1363_s5  ;;  %s1670_s29 = scalar_lea.hbm %s1755_s4, %s978_s8  ;;  %s1372_s5 = smov 16  }
 0x155   : > { %659 = vrot.lane.b32.xlu1 %v1595_v9, %s1364_s6  ;;  %545 = vrot.lane.b32.xlu0 %v1595_v9, %s1365_s25  ;;  %s793_s6 = scalar_lea.sflag [#allocation10], %s1572_s30  ;;  %s1249_s25 = scalar_lea.vmem %s1672_s9, 512 }
 0x156   : > { %p1250_p8 = scmp.ne.s32.totalorder %s1672_s9, %s1249_s25 }
 0x158   : > { %p1251_p1 = pnand %p1250_p8, %p1769_p0 }
 0x159   : > { %657 = vrot.lane.b32.xlu0 %v1595_v9, %s1366_s26  ;;  %s1373_s26 = smov [#allocation9]  }
 0x15a   : > { %p1252_p3 = pneg %p1251_p1 }
 0x1bf   : > { %v323_v11 = vpop.permute.xlu0 %322  ;;  %v434_v14 = vpop.permute.xlu1 %433 }
 0x1c0   : > { %v329_v12 = vsel %vm324_vm2, %v323_v11, 0 }
 0x1c1   : > { %1007 = vmatpush3.bf16.xpose.msra.mxu1 %v329_v12 }
 0x1c2   : > { %1018 = vmatprep.subr.bf16.mxu1 %v1358_v0 }
 0x1c3   : > { %v436_v13 = vpop.permute.xlu0 %435  ;;  %v548_v16 = vpop.permute.xlu1 %547 }
 0x1c4   : > { %v441_v15 = vsel %vm324_vm2, %v436_v13, 0  ;;  %v553_v17 = vsel %vm324_vm2, %v548_v16, 0 }
 0x1c7   : > { %v660_v18 = vpop.permute.xlu1 %659  ;;  %v546_v19 = vpop.permute.xlu0 %545 }
 0x1c8   : > { %1009 = vmatmul.mubr.msk.bf16.vlgmr.msra.gmra.mrb[0].mxu1 %vm324_vm2, %v1595_v9  ;;  %v665_v20 = vsel %vm324_vm2, %v660_v18, 0 }
 0x1c9   : > { %1019 = vmatpush3.bf16.xpose.msra.mxu1 %v441_v15  ;;  %1020 = vmatprep.mubr.msk.bf16.mxu1 %vm1359_vm0, %v1358_v0 }
 0x1ca   : > { %1030 = vmatprep.subr.bf16.mxu1 %v1358_v0 }
 0x1cb   : > { %v658_v21 = vpop.permute.xlu0 %657 }
 0x1d0   : > { %1021 = vmatmul.mubr.msk.bf16.vlgmr.msra.gmra.mrb[4].mxu1 %vm324_vm2, %v434_v14 }
 0x1d1   : > { %1031 = vmatpush3.bf16.xpose.msra.mxu1 %v553_v17  ;;  %1032 = vmatprep.mubr.msk.bf16.mxu1 %vm1359_vm0, %v1358_v0 }
 0x1d2   : > { %1042 = vmatprep.subr.bf16.mxu1 %v1358_v0 }
 0x1d8   : > { %1033 = vmatmul.mubr.msk.bf16.vlgmr.msra.gmra.mrb[8].mxu1 %vm324_vm2, %v546_v19 }
 0x1d9   : > { %1043 = vmatpush3.bf16.xpose.msra.mxu1 %v665_v20  ;;  %1044 = vmatprep.mubr.msk.bf16.mxu1 %vm1359_vm0, %v1358_v0 }
 0x1e0   : > { %1045 = vmatmul.mubr.msk.bf16.vlgmr.msra.gmra.mrb[12].mxu1 %vm324_vm2, %v658_v21 }
 0x29b   : > { %v365_v22 = vpop.f32.mrb[0].mxu1 }
 0x29c   : > { %v1010_v23 = vpop.f32.mrb[1].mxu1  ;;  %v371_v24 = vsel %vm324_vm2, %v365_v22, -inf }
 0x29d   : > { %372 = vmax.xlane.f32.xlu1 %v371_v24  ;;  %v368_v25 = vpop.f32.mrb[2].mxu1 }
 0x29e   : > { %v1011_v26 = vpop.f32.mrb[3].mxu1 }
 0x2a3   : > { %v477_v27 = vpop.f32.mrb[4].mxu1 }
 0x2a4   : > { %v1022_v28 = vpop.f32.mrb[5].mxu1  ;;  %v483_v29 = vsel %vm324_vm2, %v477_v27, -inf }
 0x2a5   : > { %484 = vmax.xlane.f32.xlu0 %v483_v29  ;;  %v480_v30 = vpop.f32.mrb[6].mxu1 }
 0x2a6   : > { %v1023_v31 = vpop.f32.mrb[7].mxu1 }
 0x2ab   : > { %v589_v32 = vpop.f32.mrb[8].mxu1 }
 0x2ac   : > { %v1034_v33 = vpop.f32.mrb[9].mxu1  ;;  %v595_v34 = vsel %vm324_vm2, %v589_v32, -inf }
 0x2ad   : > { %596 = vmax.xlane.f32.xlu0 %v595_v34  ;;  %v592_v35 = vpop.f32.mrb[10].mxu1 }
 0x2ae   : > { %v1035_v36 = vpop.f32.mrb[11].mxu1 }
 0x2b3   : > { %v701_v37 = vpop.f32.mrb[12].mxu1 }
 0x2b4   : > { %v1046_v38 = vpop.f32.mrb[13].mxu1  ;;  %v707_v39 = vsel %vm324_vm2, %v701_v37, -inf }
 0x2b5   : > { %708 = vmax.xlane.f32.xlu1 %v707_v39  ;;  %v704_v40 = vpop.f32.mrb[14].mxu1 }
 0x2b6   : > { %v1047_v41 = vpop.f32.mrb[15].mxu1 }
 0x32a   : > { %v373_v42 = vpop.xlane.xlu1 %372 }
 0x32b   : > { %v374_v43 = vsub.f32 %v365_v22, %v373_v42 }
 0x32d   : > { %v375_v44 = vmul.f32 1.442695, %v374_v43 }
 0x32f   : > { %1147 = vpow2.f32 %v375_v44 }
 0x332   : > { %v485_v45 = vpop.xlane.xlu0 %484 }
 0x333   : > { %v486_v46 = vsub.f32 %v477_v27, %v485_v45 }
 0x335   : > { %v487_v47 = vmul.f32 1.442695, %v486_v46 }
 0x337   : > { %1149 = vpow2.f32 %v487_v47 }
 0x339   : > { %v1148_v48 = vpop.eup %1147 }
 0x33a   : > { %v597_v49 = vpop.xlane.xlu0 %596  ;;  %v377_v50 = vsel %vm324_vm2, %v1148_v48, 0.0 }
 0x33b   : > { %v598_v51 = vsub.f32 %v589_v32, %v597_v49  ;;  %378 = vadd.xlane.f32.xlu0 %v377_v50 }
 0x33d   : > { %v599_v52 = vmul.f32 1.442695, %v598_v51 }
 0x33f   : > { %1151 = vpow2.f32 %v599_v52 }
 0x341   : > { %v1150_v53 = vpop.eup %1149 }
 0x342   : > { %v489_v54 = vsel %vm324_vm2, %v1150_v53, 0.0  ;;  %v709_v57 = vpop.xlane.xlu1 %708 }
 0x343   : > { %490 = vadd.xlane.f32.xlu1 %v489_v54  ;;  %v710_v58 = vsub.f32 %v701_v37, %v709_v57 }
 0x345   : > { %v711_v59 = vmul.f32 1.442695, %v710_v58 }
 0x347   : > { %1153 = vpow2.f32 %v711_v59 }
 0x349   : > { %v1152_v55 = vpop.eup %1151 }
 0x34a   : > { %v601_v56 = vsel %vm324_vm2, %v1152_v55, 0.0 }
 0x34b   : > { %602 = vadd.xlane.f32.xlu0 %v601_v56 }
 0x351   : > { %v1154_v60 = vpop.eup %1153 }
 0x352   : > { %v713_v61 = vsel %vm324_vm2, %v1154_v60, 0.0 }
 0x354   : > { %495 = vrot.lane.b32.xlu1 %v1595_v9, %s1367_s11  ;;  %s1253_s11 = sshll.u32 %s1373_s26, 4  ;;  %s1254_s11 = int_to_ptr.vmem [resolvable:$false] %s1253_s11 }
 0x355   : > { %p1256_p7 = scmp.lt.s32.totalorder %s1672_s9, %s1254_s11 }
 0x361   : > { %383 = vrot.lane.b32.xlu0 %v1595_v9, %s1368_s20  ;;  %s1255_s20 = scalar_lea.vmem %s1254_s11, 1024 }
 0x362   : > { %p1257_p9 = scmp.lt.s32.totalorder %s1255_s20, %s1249_s25 }
 0x364   : > { %p1258_p12 = por %p1257_p9, %p1256_p7 }
 0x365   : > { %719 = vrot.lane.b32.xlu0 %v1595_v9, %s1369_s14 }
 0x366   : > { %p1259_p2 = pnand %p1258_p12, %p1252_p3 }
 0x378   : > { %714 = vadd.xlane.f32.xlu1 %v713_v61 }
 0x389   : > { %607 = vrot.lane.b32.xlu1 %v1595_v9, %s1370_s28 }
 0x3c8   : > { %v379_v62 = vpop.xlane.xlu0 %378 }
 0x3c9   : > { %1155 = vrcp.f32 %v379_v62 }
 0x3d0   : > { %v491_v63 = vpop.xlane.xlu1 %490 }
 0x3d1   : > { %1157 = vrcp.f32 %v491_v63 }
 0x3d3   : > { %v1156_v1 = vpop.eup %1155 }
 0x3d4   : > { %v381_v2 = vmul.f32 %v1156_v1, %v1148_v48  ;;  %v496_v8 = vpop.permute.xlu1 %495 }
 0x3d5   : > { %v501_v10 = vsel %vm388_vm3, %v496_v8, 0 }
 0x3d6   : > { %432 = vst.msk [vmem:[%s1635_s27] sm:$0xff] %vm324_vm2, %v381_v2  ;;  %v382_v9 = vpack.c.bf16 %v381_v2, %v381_v2 }
 0x3d8   : > { %v603_v3 = vpop.xlane.xlu0 %602 }
 0x3d9   : > { %1159 = vrcp.f32 %v603_v3 }
 0x3db   : > { %v1158_v4 = vpop.eup %1157 }
 0x3dc   : > { %v493_v5 = vmul.f32 %v1158_v4, %v1150_v53  ;;  %v384_v6 = vpop.permute.xlu0 %383 }
 0x3dd   : > { %v390_v7 = vsel %vm388_vm3, %v384_v6, 0 }
 0x3de   : > { %964 = vst.msk [vmem:[%s1635_s27 + $0x8] sm:$0xff] %vm324_vm2, %v493_v5  ;;  %1013 = vmatpush3.bf16.msra.mxu0 %v390_v7  ;;  %v494_v13 = vpack.c.bf16 %v493_v5, %v493_v5 }
 0x3df   : > { %1024 = vmatprep.subr.bf16.mxu0 %v1358_v0 }
 0x3e0   : > { %v720_v17 = vpop.permute.xlu0 %719 }
 0x3e1   : > { %1015 = vmatmul.mubr.msk.bf16.vlgmr.msra.gmra.mrb[4].mxu0 %vm324_vm2, %v382_v9  ;;  %v725_v19 = vsel %vm388_vm3, %v720_v17, 0 }
 0x3e2   : > { %1025 = vmatpush3.bf16.msra.mxu0 %v501_v10  ;;  %1026 = vmatprep.mubr.msk.bf16.mxu0 %vm1359_vm0, %v1358_v0 }
 0x3e3   : > { %v1160_v11 = vpop.eup %1159  ;;  %1036 = vmatprep.subr.bf16.mxu0 %v1358_v0 }
 0x3e4   : > { %v605_v12 = vmul.f32 %v1160_v11, %v1152_v55 }
 0x3e6   : > { %967 = vst.msk [vmem:[%s1635_s27 + $0x10] sm:$0xff] %vm324_vm2, %v605_v12  ;;  %v606_v18 = vpack.c.bf16 %v605_v12, %v605_v12 }
 0x3e9   : > { %1027 = vmatmul.mubr.msk.bf16.vlgmr.msra.gmra.mrb[8].mxu0 %vm324_vm2, %v494_v13 }
 0x3ea   : > { %1038 = vmatprep.mubr.msk.bf16.mxu0 %vm1359_vm0, %v1358_v0 }
 0x405   : > { %v715_v14 = vpop.xlane.xlu1 %714 }
 0x406   : > { %1161 = vrcp.f32 %v715_v14 }
 0x409   : > { %v608_v15 = vpop.permute.xlu1 %607 }
 0x40a   : > { %v613_v16 = vsel %vm388_vm3, %v608_v15, 0 }
 0x40b   : > { %1037 = vmatpush3.bf16.msra.mxu0 %v613_v16 }
 0x40c   : > { %1048 = vmatprep.subr.bf16.mxu0 %v1358_v0 }
 0x40e   : > { %1039 = vmatmul.mubr.msk.bf16.vlgmr.msra.gmra.mrb[12].mxu0 %vm324_vm2, %v606_v18 }
 0x40f   : > { %1049 = vmatpush3.bf16.msra.mxu0 %v725_v19  ;;  %1050 = vmatprep.mubr.msk.bf16.mxu0 %vm1359_vm0, %v1358_v0 }
 0x410   : > { %v1162_v20 = vpop.eup %1161 }
 0x411   : > { %v717_v21 = vmul.f32 %v1162_v20, %v1154_v60 }
 0x413   : > { %970 = vst.msk [vmem:[%s1635_s27 + $0x18] sm:$0xff] %vm324_vm2, %v717_v21  ;;  %v718_v22 = vpack.c.bf16 %v717_v21, %v717_v21 }
 0x416   : > { %1051 = vmatmul.mubr.msk.bf16.vlgmr.msra.gmra.mrb[16].mxu0 %vm324_vm2, %v718_v22 }
 0x4b4   : > { %v1662_v23 = vpop.f32.mrb[4].mxu0 }
 0x4b5   : > { %v1016_v24 = vpop.f32.mrb[5].mxu0 }
 0x4b6   : > { %v429_v25 = vpop.f32.mrb[6].mxu0 }
 0x4b7   : > { %v1017_v26 = vpop.f32.mrb[7].mxu0 }
 0x4bc   : > { %v537_v27 = vpop.f32.mrb[8].mxu0 }
 0x4bd   : > { %770 = vrot.lane.b32.xlu1 %v537_v27, %s1371_s7  ;;  %v1028_v0 = vpop.f32.mrb[9].mxu0 }
 0x4be   : > { %v540_v28 = vpop.f32.mrb[10].mxu0 }
 0x4bf   : > { %v1029_v29 = vpop.f32.mrb[11].mxu0 }
 0x4e1   : > { %v649_v30 = vpop.f32.mrb[12].mxu0 }
 0x4e2   : > { %774 = vrot.lane.b32.xlu0 %v649_v30, %s1372_s5  ;;  %v1040_v31 = vpop.f32.mrb[13].mxu0 }
 0x4e3   : > { %v652_v32 = vpop.f32.mrb[14].mxu0 }
 0x4e4   : > { %1262 = shalt.err (!%p1259_p2)
}
 0x4e5   : > { %s1263_s14 = scalar_lea.hbm %s1670_s29, 512  ;;  %s1267_s27 = scalar_lea.hbm %s1755_s4, 1024 }
 0x4e6   : > { %p1264_p13 = scmp.ne.s32.totalorder %s1670_s29, %s1263_s14  ;;  %p1268_p4 = scmp.lt.u32.totalorder %s1670_s29, %s1755_s4 }
 0x4e7   : > { %p1269_p5 = scmp.lt.u32.totalorder %s1267_s27, %s1263_s14  ;;  %p1271_p8 = scmp.lt.u32.totalorder %s1263_s14, %s1670_s29 }
 0x4e8   : > { %p1265_p6 = pnand %p1264_p13, %p1769_p0 }
 0x4e9   : > { %p1270_p11 = por %p1269_p5, %p1268_p4 }
 0x4ea   : > { %p1266_p10 = pneg %p1265_p6 }
 0x4eb   : > { %p1272_p1 = por %p1271_p8, %p1270_p11 }
 0x4ed   : > { %p1273_p3 = pnand %p1272_p1, %p1266_p10 }
 0x4ef   : > { %1276 = shalt.err (!%p1273_p3)
}
 0x4f0   : > { %s1374_s23 = smov 128   ;;  %v1041_v33 = vpop.f32.mrb[15].mxu0  ;;  %s1375_s5 = smov 24   ;;  %vm782_vm4 = vcmask 130048   ;;  %vm784_vm5 = vcmask 195584  }
 0x4f1   : > { %1065 = dma.vmem_to_hbm [thread:$0]  (%p1769_p0), %s1672_s9, 512, %s1670_s29, %s793_s6, %s1374_s23, %s1374_s23, %s1371_s7   ;;  %v761_v34 = vpop.f32.mrb[16].mxu0 }
 0x4f2   : > { %778 = vrot.lane.b32.xlu1 %v761_v34, %s1375_s5  ;;  %v1052_v35 = vpop.f32.mrb[17].mxu0  ;;  %s954_s25 = sshll.u32 %s1572_s30, 3  ;;  %s973_s26 = sshll.u32 %s1423_s19, 7 }
 0x4f3   : > { %v764_v36 = vpop.f32.mrb[18].mxu0  ;;  %s243_s11 = scalar_lea.vmem [#allocation8], %s954_s25  ;;  %s1706_s29 = scalar_lea.hbm %s1754_s3, %s973_s26 }
 0x4f4   : > { %v1053_v37 = vpop.f32.mrb[19].mxu0  ;;  %s806_s20 = sshll.u32 %s243_s11, 4  ;;  %s788_s19 = scalar_lea.sflag [#allocation4], %s1572_s30  ;;  %s1708_s20 = int_to_ptr.vmem [resolvable:$true] %s806_s20 }
 0x4f5   : > { %s1277_s6 = scalar_lea.vmem %s1708_s20, 128  ;;  %s1376_s14 = smov [#allocation8]  }
 0x4f6   : > { %p1278_p7 = scmp.ne.s32.totalorder %s1708_s20, %s1277_s6  ;;  %s1281_s28 = sshll.u32 %s1376_s14, 4  ;;  %s1282_s28 = int_to_ptr.vmem [resolvable:$false] %s1281_s28 }
 0x4f7   : > { %s1283_s24 = scalar_lea.vmem %s1282_s28, 256  ;;  %p1284_p2 = scmp.lt.s32.totalorder %s1708_s20, %s1282_s28 }
 0x4f8   : > { %p1279_p9 = pnand %p1278_p7, %p1769_p0  ;;  %p1285_p13 = scmp.lt.s32.totalorder %s1283_s24, %s1277_s6 }
 0x4fa   : > { %p1280_p12 = pneg %p1279_p9  ;;  %p1286_p6 = por %p1285_p13, %p1284_p2 }
 0x4fc   : > { %p1287_p10 = pnand %p1286_p6, %p1280_p12 }
 0x52f   : > { %v771_v38 = vpop.permute.xlu1 %770 }
 0x530   : > { %v781_v40 = vsel %vm324_vm2, %v1662_v23, %v771_v38 }
 0x554   : > { %v775_v39 = vpop.permute.xlu0 %774 }
 0x555   : > { %v783_v41 = vsel %vm782_vm4, %v781_v40, %v775_v39 }
 0x564   : > { %v779_v42 = vpop.permute.xlu1 %778 }
 0x565   : > { %v785_v43 = vsel %vm784_vm5, %v783_v41, %v779_v42 }
 0x566   : > { %786 = vst.msk [vmem:[%s243_s11] sm:$0xff] %vm276_vm1, %v785_v43 }
 0x567   : > { %1290 = shalt.err (!%p1287_p10)
}
 0x568   : > { %s1291_s30 = scalar_lea.hbm %s1706_s29, 128  ;;  %s1295_s21 = scalar_lea.hbm %s1754_s3, 256 }
 0x569   : > { %p1292_p4 = scmp.ne.s32.totalorder %s1706_s29, %s1291_s30  ;;  %p1296_p8 = scmp.lt.u32.totalorder %s1706_s29, %s1754_s3 }
 0x56a   : > { %p1297_p1 = scmp.lt.u32.totalorder %s1295_s21, %s1291_s30  ;;  %p1299_p7 = scmp.lt.u32.totalorder %s1291_s30, %s1706_s29 }
 0x56b   : > { %p1293_p5 = pnand %p1292_p4, %p1769_p0 }
 0x56c   : > { %p1298_p3 = por %p1297_p1, %p1296_p8 }
 0x56d   : > { %p1294_p11 = pneg %p1293_p5 }
 0x56e   : > { %p1300_p9 = por %p1299_p7, %p1298_p3 }
 0x570   : > { %p1301_p12 = pnand %p1300_p9, %p1294_p11 }
 0x572   : > { %1304 = shalt.err (!%p1301_p12)
}
 0x573   : > { %1064 = dma.vmem_to_hbm [thread:$0]  (%p1769_p0), %s1708_s20, 128, %s1706_s29, %s788_s19  }
 0x574 PF: > { %s834_s25 = sand.u32 1, %s1339_s15   ;;  %p1770_p2 = scmp.ne.s32.totalorder %s1760_s22, 0 }
 0x575   : > { %p1771_p13 = scmp.ge.s32.totalorder %s1351_s18, 2  ;;  %s835_s26 = scalar_lea.sflag [#allocation4], %s834_s25 }
 0x577   : > { %p1080_p6 = pnand %p1771_p13, %p1770_p2 }
 0x579   : > { %1330 = dma.done.wait (!%p1080_p6), %s835_s26, 128  }
 0x57a   : > { %1332 = vsyncadd (!%p1080_p6), %s835_s26, 4294967168  ;;  %s844_s11 = scalar_lea.sflag [#allocation10], %s834_s25 }
 0x57b   : > { %1334 = dma.done.wait (!%p1080_p6), %s844_s11, 512  }
 0x57c   : > { %1336 = vsyncadd (!%p1080_p6), %s844_s11, 4294966784  ;;  %p22_p0 = scmp.ge.s32.totalorder %s1513_s10, 4   ;;  %s1772_s15 = smov %s1343_s16 }
 0x57d   : > { %s1773_s16 = smov %s1347_s17  ;;  %s1774_s17 = smov %s1529_s13 }
 0x57e   : > { %s1775_s18 = smov %s1513_s10  ;;  %24 = sbr.rel (!%p22_p0) target bundleno = 8 (0x8), region = 105 }
 0x585   :  { %849 = vsyncpa [#allocation3], 1 }
 0x586   :  { %851 = vsyncpa [#allocation3 + $0x1], 1 }
 0x587   :  { %852 = vsyncpa [#allocation6], 1 }
 0x588   :  { %853 = vsyncpa [#allocation4], 1 }
 0x589   :  { %855 = vsyncpa [#allocation4 + $0x1], 1 }
 0x58a   :  { %856 = vsyncpa [#allocation10], 1 }
 0x58b   :  { %858 = vsyncpa [#allocation10 + $0x1], 1 }

</bundles_post_ra>
